<compile_context>
chip_gen: v7x
topology: tpu7x:2x2x1
jax: 0.10.0
libtpu: 0.0.40
codegen_flags: <defaults>
</compile_context>

<pallas_src>
import jax
import jax.numpy as jnp
from jax import lax
from jax.experimental import pallas as pl
from jax.experimental.pallas import tpu as pltpu
from jax.scipy.special import betaln

N = 128        # x-grid points (lane-dense stand-in for the FK-table xgrid)
H = 32         # hidden width of each per-flavor net
HC = 8         # sublane chunk size for the H reduction
HCH = H // HC  # number of H chunks
U = 7          # unique flows used by forward(): 01, 02, 03, 04, 09, 10, 11
R_OUT = 9      # stacked output rows: (01, 02, 03, 04, 03, 03, 09, 10, 11)
NC = 9         # number of per-row constant planes handed to the kernel


def _combine_kernel(cp_ref, x_ref, w1_ref, b1_ref, w2_ref, o_ref):
    # cp_ref : (NC, U, N) per-row constants, lane-broadcast in the wrapper:
    #          [a_v-1, b_v-1, a_s-1, b_s-1, s, 1-s, -lnB_val, -lnB_sea, b2]
    # x_ref  : (8, N)   x-grid replicated across sublanes (broadcast on load path)
    # w*_ref : (HCH, U, HC, N) net weights, lane-broadcast (dense DMA)
    # o_ref  : (R_OUT, N) lane-dense output
    x8 = x_ref[...]                       # (8, N)
    xu = x8[0:U, :]                       # (U, N) -- every sublane holds x
    logx = jnp.log(xu)                    # computed once for all rows
    log1mx = jnp.log(1.0 - xu)

    # Beta-pdf mixture for the 7 unique rows:
    #   s * Beta(a_v, b_v).pdf(x) + (1 - s) * Beta(a_s, b_s).pdf(x)
    pdf_v = jnp.exp(cp_ref[0] * logx + cp_ref[1] * log1mx + cp_ref[6])
    pdf_s = jnp.exp(cp_ref[2] * logx + cp_ref[3] * log1mx + cp_ref[7])
    mix = cp_ref[4] * pdf_v + cp_ref[5] * pdf_s            # (U, N)

    # Tiny per-flavor MLP: Linear(1,H) -> tanh -> Linear(H,1).
    # H reduced in chunks of 8 sublanes to keep the live set small.
    xb = x8[None, :, :]                    # (1, 8, N), broadcast over U rows

    def h_chunk(c, acc):
        hc = jnp.tanh(w1_ref[c] * xb + b1_ref[c])          # (U, HC, N)
        return acc + jnp.sum(hc * w2_ref[c], axis=1)       # sublane reduce -> (U, N)

    y = lax.fori_loop(0, HCH, h_chunk,
                      jnp.zeros((U, N), jnp.float32), unroll=True)
    y = y + cp_ref[8]                       # (U, N)

    res = mix * y                           # (U, N)

    # forward() stacks (01,02,03,04,03,03,09,10,11): rows 4,5 repeat unique row 2.
    o_ref[...] = jnp.concatenate(
        [res[0:4], res[2:3], res[2:3], res[4:7]], axis=0)   # (R_OUT, N)


@jax.jit
def combine_models_forward(x, params, w1, b1, w2):
    """x: (N, 1); params: (U, 8); w1/b1/w2: (U, 1, H).  Returns (R_OUT, N)."""
    u, _, h = w1.shape
    n = x.shape[0]

    # Wrapper-side layout plumbing (one XLA fusion feeding the kernel):
    #  * x replicated onto 8 sublanes (sublane broadcast on the load path)
    #  * per-row scalars pre-derived and lane-broadcast
    #  * weights lane-broadcast and grouped by H-chunk -> dense 512 B DMA rows
    x_rep = jnp.broadcast_to(jnp.reshape(x, (1, n)), (8, n))

    cols = [params[:, k] for k in range(8)]
    a_v, b_v, a_s, b_s, s, ln_v, ln_s, b2 = cols
    consts = jnp.stack([a_v - 1.0, b_v - 1.0, a_s - 1.0, b_s - 1.0,
                        s, 1.0 - s, -ln_v, -ln_s, b2], axis=0)      # (NC, U)
    cparams = jnp.broadcast_to(consts[:, :, None], (NC, u, n))

    def slab(wt):  # (U, 1, H) -> (HCH, U, HC, N), lane-broadcast
        wt = jnp.transpose(wt, (0, 2, 1))                  # (U, H, 1)
        wt = jnp.broadcast_to(wt, (u, h, n))               # (U, H, N)
        wt = jnp.reshape(wt, (u, HCH, HC, n))
        return jnp.transpose(wt, (1, 0, 2, 3))             # (HCH, U, HC, N)

    vmem = pl.BlockSpec(memory_space=pltpu.MemorySpace.VMEM)
    return pl.pallas_call(
        _combine_kernel,
        out_shape=jax.ShapeDtypeStruct((R_OUT, n), jnp.float32),
        in_specs=[vmem] * 5,
        out_specs=vmem,
    )(cparams, x_rep, slab(w1), slab(b1), slab(w2))


def beta_w_vsr(alpha, n, delta):
    return (alpha - 1.0) * (n / delta - 1.0)


def build_inputs():
    key = jax.random.PRNGKey(0)

    # x-grid (stand-in for the FK-table xgrid / fine_x_grid): logspace in (0, 1)
    x = jnp.logspace(-7.0, -0.001, N, dtype=jnp.float32).reshape(N, 1)

    # 9 nets, each Linear(1, H) -> tanh -> Linear(H, 1)
    n_nets = 9
    keys = jax.random.split(key, 4)
    w1_all = 0.5 * jax.random.normal(keys[0], (n_nets, 1, H), dtype=jnp.float32)
    b1_all = 0.1 * jax.random.normal(keys[1], (n_nets, 1, H), dtype=jnp.float32)
    w2_all = 0.5 * jax.random.normal(keys[2], (n_nets, 1, H), dtype=jnp.float32)
    b2_all = 0.1 * jax.random.normal(keys[3], (n_nets,), dtype=jnp.float32)

    # Beta-distribution parameters (construct_flows defaults).
    val_alpha, sea_alpha, beta = 1.5, 0.8, 5.0
    delta_ph = 0.5  # placeholder for deltas_evo[3..4] (see TODO at top)
    val_beta_03 = beta_w_vsr(val_alpha, 3, delta_ph)
    val_beta_04 = beta_w_vsr(val_alpha, 1, delta_ph)

    # Unique flows used by forward(): (net_index, s, b_val).
    uniq = [(0, 0.8, beta),           # flown_01
            (1, 0.0, beta),           # flown_02
            (2, 1.0, val_beta_03),    # flown_03 (stacked at rows 2, 4, 5)
            (3, 1.0, val_beta_04),    # flown_04
            (6, 0.0, beta),           # flown_09
            (7, 0.8, beta),           # flown_10
            (8, 0.8, beta)]           # flown_11

    net_idx = jnp.array([r[0] for r in uniq], dtype=jnp.int32)
    s_vals = jnp.array([r[1] for r in uniq], dtype=jnp.float32)
    b_vals = jnp.array([r[2] for r in uniq], dtype=jnp.float32)

    a_v = jnp.full((U,), val_alpha, dtype=jnp.float32)
    a_s = jnp.full((U,), sea_alpha, dtype=jnp.float32)
    b_s = jnp.full((U,), beta, dtype=jnp.float32)
    ln_v = betaln(a_v, b_vals).astype(jnp.float32)
    ln_s = betaln(a_s, b_s).astype(jnp.float32)

    w1 = w1_all[net_idx]
    b1 = b1_all[net_idx]
    w2 = w2_all[net_idx]
    b2 = b2_all[net_idx]

    params = jnp.stack([a_v, b_vals, a_s, b_s, s_vals, ln_v, ln_s, b2], axis=1)
    return x, params, w1, b1, w2


ROW_MAP = (0, 1, 2, 3, 2, 2, 4, 5, 6)   # (01,02,03,04,03,03,09,10,11)


def reference_forward(x, params, w1, b1, w2):
    idx = jnp.array(ROW_MAP, dtype=jnp.int32)
    p, W1, B1, W2 = params[idx], w1[idx], b1[idx], w2[idx]
    a_v, b_v, a_s, b_s, s, ln_v, ln_s, b2 = [p[:, k][:, None, None] for k in range(8)]
    hmat = jnp.tanh(x[None] * W1 + B1)                      # (9, N, H)
    y = jnp.sum(hmat * W2, axis=-1, keepdims=True) + b2     # (9, N, 1)
    logx = jnp.log(x)[None]
    log1mx = jnp.log(1.0 - x)[None]
    pdf_v = jnp.exp((a_v - 1.0) * logx + (b_v - 1.0) * log1mx - ln_v)
    pdf_s = jnp.exp((a_s - 1.0) * logx + (b_s - 1.0) * log1mx - ln_s)
    return ((s * pdf_v + (1.0 - s) * pdf_s) * y)[..., 0]


if __name__ == "__main__":
    x, params, w1, b1, w2 = build_inputs()
    out = jax.block_until_ready(combine_models_forward(x, params, w1, b1, w2))
    assert out.shape == (R_OUT, N), out.shape

    ref = reference_forward(x, params, w1, b1, w2)
    assert jnp.allclose(out, ref, rtol=1e-4, atol=1e-4), \
        float(jnp.max(jnp.abs(out - ref)))

    print("KERNEL_OK")
</pallas_src>

<mosaic_0001>
module attributes {stable_mosaic.version = 11 : i64} {
  func.func @_combine_kernel(%arg0: memref<9x7x128xf32, #tpu.memory_space<vmem>>, %arg1: memref<8x128xf32, #tpu.memory_space<vmem>>, %arg2: memref<4x7x8x128xf32, #tpu.memory_space<vmem>>, %arg3: memref<4x7x8x128xf32, #tpu.memory_space<vmem>>, %arg4: memref<4x7x8x128xf32, #tpu.memory_space<vmem>>, %arg5: memref<9x128xf32, #tpu.memory_space<vmem>>) attributes {dimension_semantics = [], scalar_prefetch = 0 : i64, scratch_operands = 0 : i64, tpu.core_type = #tpu.core_type<tc>} {
    %c0 = arith.constant 0 : index
    %c0_0 = arith.constant 0 : index
    %0 = vector.load %arg1[%c0, %c0_0] : memref<8x128xf32, #tpu.memory_space<vmem>>, vector<8x128xf32>
    %1 = vector.extract_strided_slice %0 {offsets = [0, 0], sizes = [7, 128], strides = [1, 1]} : vector<8x128xf32> to vector<7x128xf32>
    %2 = math.log %1 : vector<7x128xf32>
    %cst = arith.constant 1.000000e+00 : f32
    %3 = vector.broadcast %cst : f32 to vector<7x128xf32>
    %4 = arith.subf %3, %1 : vector<7x128xf32>
    %5 = math.log %4 : vector<7x128xf32>
    %c0_1 = arith.constant 0 : index
    %c0_2 = arith.constant 0 : index
    %c0_3 = arith.constant 0 : index
    %6 = vector.load %arg0[%c0_1, %c0_2, %c0_3] : memref<9x7x128xf32, #tpu.memory_space<vmem>>, vector<1x7x128xf32>
    %7 = vector.shape_cast %6 : vector<1x7x128xf32> to vector<7x128xf32>
    %8 = arith.mulf %7, %2 : vector<7x128xf32>
    %c1 = arith.constant 1 : index
    %c0_4 = arith.constant 0 : index
    %c0_5 = arith.constant 0 : index
    %9 = vector.load %arg0[%c1, %c0_4, %c0_5] : memref<9x7x128xf32, #tpu.memory_space<vmem>>, vector<1x7x128xf32>
    %10 = vector.shape_cast %9 : vector<1x7x128xf32> to vector<7x128xf32>
    %11 = arith.mulf %10, %5 : vector<7x128xf32>
    %12 = arith.addf %8, %11 : vector<7x128xf32>
    %c6 = arith.constant 6 : index
    %c0_6 = arith.constant 0 : index
    %c0_7 = arith.constant 0 : index
    %13 = vector.load %arg0[%c6, %c0_6, %c0_7] : memref<9x7x128xf32, #tpu.memory_space<vmem>>, vector<1x7x128xf32>
    %14 = vector.shape_cast %13 : vector<1x7x128xf32> to vector<7x128xf32>
    %15 = arith.addf %12, %14 : vector<7x128xf32>
    %16 = math.exp %15 : vector<7x128xf32>
    %c2 = arith.constant 2 : index
    %c0_8 = arith.constant 0 : index
    %c0_9 = arith.constant 0 : index
    %17 = vector.load %arg0[%c2, %c0_8, %c0_9] : memref<9x7x128xf32, #tpu.memory_space<vmem>>, vector<1x7x128xf32>
    %18 = vector.shape_cast %17 : vector<1x7x128xf32> to vector<7x128xf32>
    %19 = arith.mulf %18, %2 : vector<7x128xf32>
    %c3 = arith.constant 3 : index
    %c0_10 = arith.constant 0 : index
    %c0_11 = arith.constant 0 : index
    %20 = vector.load %arg0[%c3, %c0_10, %c0_11] : memref<9x7x128xf32, #tpu.memory_space<vmem>>, vector<1x7x128xf32>
    %21 = vector.shape_cast %20 : vector<1x7x128xf32> to vector<7x128xf32>
    %22 = arith.mulf %21, %5 : vector<7x128xf32>
    %23 = arith.addf %19, %22 : vector<7x128xf32>
    %c7 = arith.constant 7 : index
    %c0_12 = arith.constant 0 : index
    %c0_13 = arith.constant 0 : index
    %24 = vector.load %arg0[%c7, %c0_12, %c0_13] : memref<9x7x128xf32, #tpu.memory_space<vmem>>, vector<1x7x128xf32>
    %25 = vector.shape_cast %24 : vector<1x7x128xf32> to vector<7x128xf32>
    %26 = arith.addf %23, %25 : vector<7x128xf32>
    %27 = math.exp %26 : vector<7x128xf32>
    %c4 = arith.constant 4 : index
    %c0_14 = arith.constant 0 : index
    %c0_15 = arith.constant 0 : index
    %28 = vector.load %arg0[%c4, %c0_14, %c0_15] : memref<9x7x128xf32, #tpu.memory_space<vmem>>, vector<1x7x128xf32>
    %29 = vector.shape_cast %28 : vector<1x7x128xf32> to vector<7x128xf32>
    %30 = arith.mulf %29, %16 : vector<7x128xf32>
    %c5 = arith.constant 5 : index
    %c0_16 = arith.constant 0 : index
    %c0_17 = arith.constant 0 : index
    %31 = vector.load %arg0[%c5, %c0_16, %c0_17] : memref<9x7x128xf32, #tpu.memory_space<vmem>>, vector<1x7x128xf32>
    %32 = vector.shape_cast %31 : vector<1x7x128xf32> to vector<7x128xf32>
    %33 = arith.mulf %32, %27 : vector<7x128xf32>
    %34 = arith.addf %30, %33 : vector<7x128xf32>
    %35 = vector.shape_cast %0 : vector<8x128xf32> to vector<1x8x128xf32>
    %cst_18 = arith.constant 0.000000e+00 : f32
    %36 = vector.broadcast %cst_18 : f32 to vector<7x128xf32>
    %c0_i32 = arith.constant 0 : i32
    %37 = arith.index_cast %c0_i32 : i32 to index
    %c0_19 = arith.constant 0 : index
    %c0_20 = arith.constant 0 : index
    %c0_21 = arith.constant 0 : index
    %38 = vector.load %arg2[%37, %c0_19, %c0_20, %c0_21] : memref<4x7x8x128xf32, #tpu.memory_space<vmem>>, vector<1x7x8x128xf32>
    %39 = vector.shape_cast %38 : vector<1x7x8x128xf32> to vector<7x8x128xf32>
    %40 = vector.broadcast %35 : vector<1x8x128xf32> to vector<7x8x128xf32>
    %41 = arith.mulf %39, %40 : vector<7x8x128xf32>
    %42 = arith.index_cast %c0_i32 : i32 to index
    %c0_22 = arith.constant 0 : index
    %c0_23 = arith.constant 0 : index
    %c0_24 = arith.constant 0 : index
    %43 = vector.load %arg3[%42, %c0_22, %c0_23, %c0_24] : memref<4x7x8x128xf32, #tpu.memory_space<vmem>>, vector<1x7x8x128xf32>
    %44 = vector.shape_cast %43 : vector<1x7x8x128xf32> to vector<7x8x128xf32>
    %45 = arith.addf %41, %44 : vector<7x8x128xf32>
    %46 = math.tanh %45 : vector<7x8x128xf32>
    %47 = arith.index_cast %c0_i32 : i32 to index
    %c0_25 = arith.constant 0 : index
    %c0_26 = arith.constant 0 : index
    %c0_27 = arith.constant 0 : index
    %48 = vector.load %arg4[%47, %c0_25, %c0_26, %c0_27] : memref<4x7x8x128xf32, #tpu.memory_space<vmem>>, vector<1x7x8x128xf32>
    %49 = vector.shape_cast %48 : vector<1x7x8x128xf32> to vector<7x8x128xf32>
    %50 = arith.mulf %46, %49 : vector<7x8x128xf32>
    %cst_28 = arith.constant dense<0.000000e+00> : vector<7x128xf32>
    %51 = vector.multi_reduction <add>, %50, %cst_28 [1] : vector<7x8x128xf32> to vector<7x128xf32>
    %52 = arith.addf %36, %51 : vector<7x128xf32>
    %c1_i32 = arith.constant 1 : i32
    %53 = arith.index_cast %c1_i32 : i32 to index
    %c0_29 = arith.constant 0 : index
    %c0_30 = arith.constant 0 : index
    %c0_31 = arith.constant 0 : index
    %54 = vector.load %arg2[%53, %c0_29, %c0_30, %c0_31] : memref<4x7x8x128xf32, #tpu.memory_space<vmem>>, vector<1x7x8x128xf32>
    %55 = vector.shape_cast %54 : vector<1x7x8x128xf32> to vector<7x8x128xf32>
    %56 = vector.broadcast %35 : vector<1x8x128xf32> to vector<7x8x128xf32>
    %57 = arith.mulf %55, %56 : vector<7x8x128xf32>
    %58 = arith.index_cast %c1_i32 : i32 to index
    %c0_32 = arith.constant 0 : index
    %c0_33 = arith.constant 0 : index
    %c0_34 = arith.constant 0 : index
    %59 = vector.load %arg3[%58, %c0_32, %c0_33, %c0_34] : memref<4x7x8x128xf32, #tpu.memory_space<vmem>>, vector<1x7x8x128xf32>
    %60 = vector.shape_cast %59 : vector<1x7x8x128xf32> to vector<7x8x128xf32>
    %61 = arith.addf %57, %60 : vector<7x8x128xf32>
    %62 = math.tanh %61 : vector<7x8x128xf32>
    %63 = arith.index_cast %c1_i32 : i32 to index
    %c0_35 = arith.constant 0 : index
    %c0_36 = arith.constant 0 : index
    %c0_37 = arith.constant 0 : index
    %64 = vector.load %arg4[%63, %c0_35, %c0_36, %c0_37] : memref<4x7x8x128xf32, #tpu.memory_space<vmem>>, vector<1x7x8x128xf32>
    %65 = vector.shape_cast %64 : vector<1x7x8x128xf32> to vector<7x8x128xf32>
    %66 = arith.mulf %62, %65 : vector<7x8x128xf32>
    %cst_38 = arith.constant dense<0.000000e+00> : vector<7x128xf32>
    %67 = vector.multi_reduction <add>, %66, %cst_38 [1] : vector<7x8x128xf32> to vector<7x128xf32>
    %68 = arith.addf %52, %67 : vector<7x128xf32>
    %c2_i32 = arith.constant 2 : i32
    %69 = arith.index_cast %c2_i32 : i32 to index
    %c0_39 = arith.constant 0 : index
    %c0_40 = arith.constant 0 : index
    %c0_41 = arith.constant 0 : index
    %70 = vector.load %arg2[%69, %c0_39, %c0_40, %c0_41] : memref<4x7x8x128xf32, #tpu.memory_space<vmem>>, vector<1x7x8x128xf32>
    %71 = vector.shape_cast %70 : vector<1x7x8x128xf32> to vector<7x8x128xf32>
    %72 = vector.broadcast %35 : vector<1x8x128xf32> to vector<7x8x128xf32>
    %73 = arith.mulf %71, %72 : vector<7x8x128xf32>
    %74 = arith.index_cast %c2_i32 : i32 to index
    %c0_42 = arith.constant 0 : index
    %c0_43 = arith.constant 0 : index
    %c0_44 = arith.constant 0 : index
    %75 = vector.load %arg3[%74, %c0_42, %c0_43, %c0_44] : memref<4x7x8x128xf32, #tpu.memory_space<vmem>>, vector<1x7x8x128xf32>
    %76 = vector.shape_cast %75 : vector<1x7x8x128xf32> to vector<7x8x128xf32>
    %77 = arith.addf %73, %76 : vector<7x8x128xf32>
    %78 = math.tanh %77 : vector<7x8x128xf32>
    %79 = arith.index_cast %c2_i32 : i32 to index
    %c0_45 = arith.constant 0 : index
    %c0_46 = arith.constant 0 : index
    %c0_47 = arith.constant 0 : index
    %80 = vector.load %arg4[%79, %c0_45, %c0_46, %c0_47] : memref<4x7x8x128xf32, #tpu.memory_space<vmem>>, vector<1x7x8x128xf32>
    %81 = vector.shape_cast %80 : vector<1x7x8x128xf32> to vector<7x8x128xf32>
    %82 = arith.mulf %78, %81 : vector<7x8x128xf32>
    %cst_48 = arith.constant dense<0.000000e+00> : vector<7x128xf32>
    %83 = vector.multi_reduction <add>, %82, %cst_48 [1] : vector<7x8x128xf32> to vector<7x128xf32>
    %84 = arith.addf %68, %83 : vector<7x128xf32>
    %c3_i32 = arith.constant 3 : i32
    %85 = arith.index_cast %c3_i32 : i32 to index
    %c0_49 = arith.constant 0 : index
    %c0_50 = arith.constant 0 : index
    %c0_51 = arith.constant 0 : index
    %86 = vector.load %arg2[%85, %c0_49, %c0_50, %c0_51] : memref<4x7x8x128xf32, #tpu.memory_space<vmem>>, vector<1x7x8x128xf32>
    %87 = vector.shape_cast %86 : vector<1x7x8x128xf32> to vector<7x8x128xf32>
    %88 = vector.broadcast %35 : vector<1x8x128xf32> to vector<7x8x128xf32>
    %89 = arith.mulf %87, %88 : vector<7x8x128xf32>
    %90 = arith.index_cast %c3_i32 : i32 to index
    %c0_52 = arith.constant 0 : index
    %c0_53 = arith.constant 0 : index
    %c0_54 = arith.constant 0 : index
    %91 = vector.load %arg3[%90, %c0_52, %c0_53, %c0_54] : memref<4x7x8x128xf32, #tpu.memory_space<vmem>>, vector<1x7x8x128xf32>
    %92 = vector.shape_cast %91 : vector<1x7x8x128xf32> to vector<7x8x128xf32>
    %93 = arith.addf %89, %92 : vector<7x8x128xf32>
    %94 = math.tanh %93 : vector<7x8x128xf32>
    %95 = arith.index_cast %c3_i32 : i32 to index
    %c0_55 = arith.constant 0 : index
    %c0_56 = arith.constant 0 : index
    %c0_57 = arith.constant 0 : index
    %96 = vector.load %arg4[%95, %c0_55, %c0_56, %c0_57] : memref<4x7x8x128xf32, #tpu.memory_space<vmem>>, vector<1x7x8x128xf32>
    %97 = vector.shape_cast %96 : vector<1x7x8x128xf32> to vector<7x8x128xf32>
    %98 = arith.mulf %94, %97 : vector<7x8x128xf32>
    %cst_58 = arith.constant dense<0.000000e+00> : vector<7x128xf32>
    %99 = vector.multi_reduction <add>, %98, %cst_58 [1] : vector<7x8x128xf32> to vector<7x128xf32>
    %100 = arith.addf %84, %99 : vector<7x128xf32>
    %c4_i32 = arith.constant 4 : i32
    %c8 = arith.constant 8 : index
    %c0_59 = arith.constant 0 : index
    %c0_60 = arith.constant 0 : index
    %101 = vector.load %arg0[%c8, %c0_59, %c0_60] : memref<9x7x128xf32, #tpu.memory_space<vmem>>, vector<1x7x128xf32>
    %102 = vector.shape_cast %101 : vector<1x7x128xf32> to vector<7x128xf32>
    %103 = arith.addf %100, %102 : vector<7x128xf32>
    %104 = arith.mulf %34, %103 : vector<7x128xf32>
    %105 = vector.extract_strided_slice %104 {offsets = [0, 0], sizes = [4, 128], strides = [1, 1]} : vector<7x128xf32> to vector<4x128xf32>
    %106 = vector.extract_strided_slice %104 {offsets = [2, 0], sizes = [1, 128], strides = [1, 1]} : vector<7x128xf32> to vector<1x128xf32>
    %107 = vector.extract_strided_slice %104 {offsets = [2, 0], sizes = [1, 128], strides = [1, 1]} : vector<7x128xf32> to vector<1x128xf32>
    %108 = vector.extract_strided_slice %104 {offsets = [4, 0], sizes = [3, 128], strides = [1, 1]} : vector<7x128xf32> to vector<3x128xf32>
    %109 = tpu.concatenate %105, %106, %107, %108 in 0 : vector<4x128xf32>, vector<1x128xf32>, vector<1x128xf32>, vector<3x128xf32> -> vector<9x128xf32>
    %c0_61 = arith.constant 0 : index
    %c0_62 = arith.constant 0 : index
    %110 = vector.load %arg5[%c0_61, %c0_62] : memref<9x128xf32, #tpu.memory_space<vmem>>, vector<9x128xf32>
    tpu.vector_store %arg5[%c0_61, %c0_62], %109 {strides = array<i32>} : memref<9x128xf32, #tpu.memory_space<vmem>>, vector<9x128xf32>,
    return
  }
}

</mosaic_0001>

<bundles_post_ra>
// kernel: combine_models_forward.1
= control target key start
LH: loop header
LB: loop body
LE: loop exit
PB: predicated region body
PF: predicated region fallthrough
CT: control target
= control target key end

     0   :  { %10 = vsyncpa [#allocation3], 0  ;;  %vm489_vm0 = vcmask 1041409   ;;  %vm492_vm1 = vcmask 1042434   ;;  %vm495_vm2 = vcmask 1043459   ;;  %vm498_vm3 = vcmask 1044484   ;;  %s1138_s0 = inlined_call_operand.vmem [shape: f32[9,7,128], index: 0, kind: input, shape index: {}]   ;;  %s1139_s1 = inlined_call_operand.vmem [shape: f32[8,128], index: 1, kind: input, shape index: {}]   ;;  %s1140_s2 = inlined_call_operand.vmem [shape: f32[4,7,8,128], index: 2, kind: input, shape index: {}]   ;;  %s1141_s3 = inlined_call_operand.vmem [shape: f32[4,7,8,128], index: 3, kind: input, shape index: {}]   ;;  %s1142_s4 = inlined_call_operand.vmem [shape: f32[4,7,8,128], index: 4, kind: input, shape index: {}]   ;;  %s1143_s5 = inlined_call_operand.hbm [shape: f32[9,128], index: 5, kind: output, shape index: {}]  }
   0x1   :  { %v735_v0 = vld [vmem:[%s1139_s1] sm:$0xff]  ;;  %v58_v4 = vld [vmem:[%s1140_s2 + $0x8] sm:$0xff]  ;;  %v59_v5 = vld [vmem:[%s1140_s2 + $0x10] sm:$0xff]  ;;  %vm501_vm4 = vcmask 1045509   ;;  %vm504_vm5 = vcmask 1046534   ;;  %vm513_vm6 = vcmask 1043456  }
   0x2   :  { %v57_v1 = vld [vmem:[%s1140_s2] sm:$0xff]  ;;  %v24_v2 = vsub.f32 1.0, %v735_v0  ;;  %v60_v6 = vld [vmem:[%s1140_s2 + $0x18] sm:$0xff]  ;;  %v65_v8 = vmul.f32 %v58_v4, %v735_v0  ;;  %611 = vlog2.f32 %v735_v0  ;;  %v62_v9 = vld [vmem:[%s1140_s2 + $0x28] sm:$0xff]  ;;  %v66_v11 = vmul.f32 %v59_v5, %v735_v0 }
   0x3   :  { %v64_v3 = vmul.f32 %v57_v1, %v735_v0  ;;  %v61_v7 = vld [vmem:[%s1140_s2 + $0x20] sm:$0xff]  ;;  %v63_v10 = vld [vmem:[%s1140_s2 + $0x30] sm:$0xff]  ;;  %v67_v12 = vmul.f32 %v60_v6, %v735_v0  ;;  %v69_v15 = vmul.f32 %v62_v9, %v735_v0  ;;  %v72_v16 = vld [vmem:[%s1141_s3 + $0x8] sm:$0xff]  ;;  %vm515_vm7 = vcmask 1044480  }
   0x4   :  { %v68_v13 = vmul.f32 %v61_v7, %v735_v0  ;;  %v71_v14 = vld [vmem:[%s1141_s3] sm:$0xff]  ;;  %613 = vlog2.f32 %v24_v2  ;;  %v73_v17 = vld [vmem:[%s1141_s3 + $0x10] sm:$0xff]  ;;  %v74_v18 = vld [vmem:[%s1141_s3 + $0x18] sm:$0xff]  ;;  %v70_v20 = vmul.f32 %v63_v10, %v735_v0  ;;  %v79_v23 = vadd.f32 %v72_v16, %v65_v8 }
   0x5   :  { %v78_v19 = vadd.f32 %v71_v14, %v64_v3  ;;  %v75_v21 = vld [vmem:[%s1141_s3 + $0x20] sm:$0xff]  ;;  %v76_v22 = vld [vmem:[%s1141_s3 + $0x28] sm:$0xff]  ;;  %v80_v24 = vadd.f32 %v73_v17, %v66_v11  ;;  %v81_v25 = vadd.f32 %v74_v18, %v67_v12  ;;  %v77_v26 = vld [vmem:[%s1141_s3 + $0x30] sm:$0xff]  ;;  %vm517_vm8 = vcmask 1045504  }
   0x6   :  { %v82_v27 = vadd.f32 %v75_v21, %v68_v13  ;;  %v83_v28 = vadd.f32 %v76_v22, %v69_v15  ;;  %v544_v29 = vld [vmem:[%s1140_s2 + $0x38] sm:$0xff]  ;;  %v545_v30 = vld [vmem:[%s1140_s2 + $0x40] sm:$0xff]  ;;  %v84_v31 = vadd.f32 %v77_v26, %v70_v20  ;;  %v546_v32 = vld [vmem:[%s1140_s2 + $0x48] sm:$0xff] }
   0x7   :  { %615 = vtanh.f32 %v78_v19  ;;  %v547_v33 = vld [vmem:[%s1140_s2 + $0x50] sm:$0xff]  ;;  %v548_v34 = vld [vmem:[%s1140_s2 + $0x58] sm:$0xff]  ;;  %v163_v35 = vmul.f32 %v544_v29, %v735_v0  ;;  %v164_v36 = vmul.f32 %v545_v30, %v735_v0  ;;  %v165_v37 = vmul.f32 %v546_v32, %v735_v0  ;;  %v549_v39 = vld [vmem:[%s1140_s2 + $0x60] sm:$0xff] }
   0x8   :  { %617 = vtanh.f32 %v79_v23  ;;  %v551_v38 = vld [vmem:[%s1141_s3 + $0x38] sm:$0xff]  ;;  %v166_v40 = vmul.f32 %v547_v33, %v735_v0  ;;  %v552_v41 = vld [vmem:[%s1141_s3 + $0x40] sm:$0xff]  ;;  %v553_v42 = vld [vmem:[%s1141_s3 + $0x48] sm:$0xff]  ;;  %v167_v43 = vmul.f32 %v548_v34, %v735_v0  ;;  %v168_v52 = vmul.f32 %v549_v39, %v735_v0 }
   0x9   :  { %619 = vtanh.f32 %v80_v24  ;;  %v554_v44 = vld [vmem:[%s1141_s3 + $0x50] sm:$0xff]  ;;  %v555_v46 = vld [vmem:[%s1141_s3 + $0x58] sm:$0xff]  ;;  %v178_v47 = vadd.f32 %v551_v38, %v163_v35  ;;  %v179_v48 = vadd.f32 %v552_v41, %v164_v36  ;;  %v92_v50 = vld [vmem:[%s1142_s4] sm:$0xff]  ;;  %v180_v53 = vadd.f32 %v553_v42, %v165_v37 }
   0xa   :  { %621 = vtanh.f32 %v81_v25  ;;  %v550_v51 = vld [vmem:[%s1140_s2 + $0x68] sm:$0xff]  ;;  %v556_v55 = vld [vmem:[%s1141_s3 + $0x60] sm:$0xff]  ;;  %v181_v56 = vadd.f32 %v554_v44, %v166_v40  ;;  %v94_v59 = vld [vmem:[%s1142_s4 + $0x10] sm:$0xff]  ;;  %v182_v60 = vadd.f32 %v555_v46, %v167_v43 }
   0xb   :  { %623 = vtanh.f32 %v82_v27  ;;  %v93_v54 = vld [vmem:[%s1142_s4 + $0x8] sm:$0xff]  ;;  %v95_v63 = vld [vmem:[%s1142_s4 + $0x18] sm:$0xff]  ;;  %v169_v2 = vmul.f32 %v550_v51, %v735_v0  ;;  %v27_v4 = vld [vmem:[%s1138_s0] sm:$0x7f]  ;;  %v183_v8 = vadd.f32 %v556_v55, %v168_v52 }
   0xc   :  { %625 = vtanh.f32 %v83_v28  ;;  %v612_v45 = vpop.eup %611  ;;  %v537_v5 = vld [vmem:[%s1138_s0 + $0x8] sm:$0x7f]  ;;  %v96_v12 = vld [vmem:[%s1142_s4 + $0x20] sm:$0xff]  ;;  %v539_v17 = vld [vmem:[%s1138_s0 + $0x10] sm:$0x7f] }
   0xd   :  { %627 = vtanh.f32 %v84_v31  ;;  %v23_v58 = vmul.f32 0.6931472, %v612_v45  ;;  %v557_v7 = vld [vmem:[%s1141_s3 + $0x68] sm:$0xff]  ;;  %v540_v18 = vld [vmem:[%s1138_s0 + $0x18] sm:$0x7f]  ;;  %v98_v25 = vld [vmem:[%s1142_s4 + $0x30] sm:$0xff] }
   0xe   :  { %v614_v49 = vpop.eup %613  ;;  %629 = vtanh.f32 %v178_v47  ;;  %v97_v19 = vld [vmem:[%s1142_s4 + $0x28] sm:$0xff]  ;;  %v184_v21 = vadd.f32 %v557_v7, %v169_v2  ;;  %v538_v34 = vld [vmem:[%s1138_s0 + $0x30] sm:$0x7f]  ;;  %v558_v38 = vld [vmem:[%s1142_s4 + $0x38] sm:$0xff] }
   0xf   :  { %v26_v62 = vmul.f32 0.6931472, %v614_v49  ;;  %631 = vtanh.f32 %v179_v48  ;;  %v28_v15 = vmul.f32 %v27_v4, %v23_v58  ;;  %v40_v28 = vmul.f32 %v539_v17, %v23_v58  ;;  %v565_v39 = vld [vmem:[%s1140_s2 + $0x70] sm:$0xff]  ;;  %v559_v43 = vld [vmem:[%s1142_s4 + $0x40] sm:$0xff]  ;;  %v566_v47 = vld [vmem:[%s1140_s2 + $0x78] sm:$0xff] }
  0x10   :  { %633 = vtanh.f32 %v180_v53  ;;  %v567_v48 = vld [vmem:[%s1140_s2 + $0x80] sm:$0xff]  ;;  %v541_v51 = vld [vmem:[%s1138_s0 + $0x38] sm:$0x7f]  ;;  %v560_v53 = vld [vmem:[%s1142_s4 + $0x48] sm:$0xff]  ;;  %v904_v2 = vmul.f32 %v566_v47, %v735_v0 }
  0x11   :  { %v616_v57 = vpop.eup %615  ;;  %635 = vtanh.f32 %v181_v56  ;;  %v31_v16 = vmul.f32 %v537_v5, %v26_v62  ;;  %v43_v29 = vmul.f32 %v540_v18, %v26_v62  ;;  %v898_v56 = vmul.f32 %v565_v39, %v735_v0  ;;  %v563_v7 = vld [vmem:[%s1142_s4 + $0x60] sm:$0xff]  ;;  %v564_v17 = vld [vmem:[%s1142_s4 + $0x68] sm:$0xff] }
  0x12   :  { %v618_v61 = vpop.eup %617  ;;  %v99_v1 = vmul.f32 %v616_v57, %v92_v50  ;;  %637 = vtanh.f32 %v182_v60 }
  0x13   :  { %v620_v3 = vpop.eup %619  ;;  %v100_v6 = vmul.f32 %v618_v61, %v93_v54  ;;  %639 = vtanh.f32 %v183_v8  ;;  %v32_v31 = vadd.f32 %v31_v16, %v28_v15  ;;  %v44_v45 = vadd.f32 %v43_v29, %v40_v28  ;;  %v561_v54 = vld [vmem:[%s1142_s4 + $0x50] sm:$0xff]  ;;  %v562_v61 = vld [vmem:[%s1142_s4 + $0x58] sm:$0xff] }
  0x14   :  { %v622_v9 = vpop.eup %621  ;;  %v101_v10 = vmul.f32 %v620_v3, %v94_v59  ;;  %v106_v20 = vrot.slane %v99_v1, 4  ;;  %641 = vtanh.f32 %v184_v21  ;;  %v907_v3 = vmul.f32 %v567_v48, %v735_v0 }
  0x15   :  { %v624_v11 = vpop.eup %623  ;;  %v102_v13 = vmul.f32 %v622_v9, %v95_v63  ;;  %v112_v22 = vrot.slane %v100_v6, 4  ;;  %v35_v50 = vadd.f32 %v538_v34, %v32_v31  ;;  %v47_v5 = vadd.f32 %v541_v51, %v44_v45  ;;  %v569_v51 = vld [vmem:[%s1140_s2 + $0x90] sm:$0xff] }
  0x16   :  { %v626_v14 = vpop.eup %625  ;;  %v118_v23 = vrot.slane %v101_v10, 4  ;;  %v103_v26 = vmul.f32 %v624_v11, %v96_v12  ;;  %v107_v32 = vadd.f32 %v106_v20, %v99_v1 }
  0x17   :  { %v628_v24 = vpop.eup %627  ;;  %v124_v27 = vrot.slane %v102_v13, 4  ;;  %v104_v30 = vmul.f32 %v626_v14, %v97_v19  ;;  %v113_v36 = vadd.f32 %v112_v22, %v100_v6  ;;  %v48_v28 = vmul.f32 1.442695, %v47_v5 }
  0x18   :  { %v630_v33 = vpop.eup %629  ;;  %v105_v35 = vmul.f32 %v628_v24, %v98_v25  ;;  %v119_v37 = vadd.f32 %v118_v23, %v101_v10  ;;  %v130_v42 = vrot.slane %v103_v26, 4  ;;  %v108_v52 = vrot.slane %v107_v32, 2 }
  0x19   :  { %v632_v40 = vpop.eup %631  ;;  %v125_v41 = vadd.f32 %v124_v27, %v102_v13  ;;  %v136_v46 = vrot.slane %v104_v30, 4  ;;  %v200_v55 = vmul.f32 %v630_v33, %v558_v38  ;;  %v114_v58 = vrot.slane %v113_v36, 2 }
  0x1a   :  { %v634_v44 = vpop.eup %633  ;;  %v120_v59 = vrot.slane %v119_v37, 2  ;;  %v142_v60 = vrot.slane %v105_v35, 4  ;;  %v201_v62 = vmul.f32 %v632_v40, %v559_v43  ;;  %v131_v1 = vadd.f32 %v130_v42, %v103_v26 }
  0x1b   :  { %v636_v49 = vpop.eup %635  ;;  %v126_v63 = vrot.slane %v125_v41, 2  ;;  %v137_v6 = vadd.f32 %v136_v46, %v104_v30  ;;  %v202_v8 = vmul.f32 %v634_v44, %v560_v53  ;;  %v36_v10 = vmul.f32 1.442695, %v35_v50 }
  0x1c   :  { %v638_v57 = vpop.eup %637  ;;  %v203_v9 = vmul.f32 %v636_v49, %v561_v54  ;;  %v109_v11 = vadd.f32 %v108_v52, %v107_v32  ;;  %v207_v13 = vrot.slane %v200_v55, 4  ;;  %v115_v14 = vadd.f32 %v114_v58, %v113_v36  ;;  %v572_v52 = vld [vmem:[%s1141_s3 + $0x70] sm:$0xff]  ;;  %v570_v58 = vld [vmem:[%s1140_s2 + $0x98] sm:$0xff] }
  0x1d   :  { %v640_v4 = vpop.eup %639  ;;  %v204_v12 = vmul.f32 %v638_v57, %v562_v61  ;;  %v121_v15 = vadd.f32 %v120_v59, %v119_v37  ;;  %v143_v16 = vadd.f32 %v142_v60, %v105_v35  ;;  %v213_v18 = vrot.slane %v201_v62, 4  ;;  %v568_v35 = vld [vmem:[%s1140_s2 + $0x88] sm:$0xff]  ;;  %v573_v59 = vld [vmem:[%s1141_s3 + $0x78] sm:$0xff] }
  0x1e   :  { %v642_v19 = vpop.eup %641  ;;  %v127_v20 = vadd.f32 %v126_v63, %v125_v41  ;;  %v132_v21 = vrot.slane %v131_v1, 2  ;;  %v205_v22 = vmul.f32 %v640_v4, %v563_v7  ;;  %v208_v23 = vadd.f32 %v207_v13, %v200_v55  ;;  %v574_v4 = vld [vmem:[%s1141_s3 + $0x80] sm:$0xff]  ;;  %v576_v13 = vld [vmem:[%s1141_s3 + $0x90] sm:$0xff] }
  0x1f   :  { %v138_v24 = vrot.slane %v137_v6, 2  ;;  %v214_v25 = vadd.f32 %v213_v18, %v201_v62  ;;  %v219_v26 = vrot.slane %v202_v8, 4  ;;  %v225_v27 = vrot.slane %v203_v9, 4 }
  0x20   :  { %643 = vpow2.f32 %v36_v10  ;;  %v206_v29 = vmul.f32 %v642_v19, %v564_v17  ;;  %v231_v30 = vrot.slane %v204_v12, 4  ;;  %v110_v31 = vrot.slane %v109_v11, 1 }
  0x21   :  { %v116_v32 = vrot.slane %v115_v14, 1  ;;  %v144_v33 = vrot.slane %v143_v16, 2  ;;  %v209_v34 = vrot.slane %v208_v23, 2  ;;  %v122_v36 = vrot.slane %v121_v15, 1 }
  0x22   :  { %v128_v37 = vrot.slane %v127_v20, 1  ;;  %v133_v38 = vadd.f32 %v132_v21, %v131_v1  ;;  %v237_v39 = vrot.slane %v205_v22, 4  ;;  %v918_v40 = vadd.f32 %v138_v24, %v137_v6  ;;  %v571_v1 = vld [vmem:[%s1140_s2 + $0xa0] sm:$0xff] }
  0x23   :  { %v215_v41 = vrot.slane %v214_v25, 2  ;;  %v220_v42 = vadd.f32 %v219_v26, %v202_v8  ;;  %v226_v43 = vadd.f32 %v225_v27, %v203_v9  ;;  %645 = vpow2.f32 %v48_v28  ;;  %v575_v8 = vld [vmem:[%s1141_s3 + $0x88] sm:$0xff] }
  0x24   :  { %v232_v44 = vadd.f32 %v231_v30, %v204_v12  ;;  %v243_v45 = vrot.slane %v206_v29, 4  ;;  %v267_v46 = vmul.f32 %v568_v35, %v735_v0  ;;  %v921_v47 = vadd.f32 %v110_v31, %v109_v11  ;;  %v589_v31 = vld [vmem:[%s1140_s2 + $0xc0] sm:$0xff] }
  0x25   :  { %v923_v48 = vadd.f32 %v116_v32, %v115_v14  ;;  %v925_v49 = vadd.f32 %v144_v33, %v143_v16  ;;  %v210_v50 = vadd.f32 %v209_v34, %v208_v23  ;;  %v933_v53 = vadd.f32 %v122_v36, %v121_v15  ;;  %v578_v23 = vld [vmem:[%s1141_s3 + $0xa0] sm:$0xff]  ;;  %v590_v36 = vld [vmem:[%s1140_s2 + $0xc8] sm:$0xff] }
  0x26   :  { %v935_v54 = vadd.f32 %v128_v37, %v127_v20  ;;  %v134_v55 = vrot.slane %v133_v38, 1  ;;  %v238_v57 = vadd.f32 %v237_v39, %v205_v22  ;;  %v140_v60 = vrot.slane %v918_v40, 1  ;;  %v586_v20 = vld [vmem:[%s1140_s2 + $0xa8] sm:$0xff] }
  0x27   :  { %v216_v61 = vadd.f32 %v215_v41, %v214_v25  ;;  %v221_v62 = vrot.slane %v220_v42, 2  ;;  %v227_v63 = vrot.slane %v226_v43, 2  ;;  %v233_v5 = vrot.slane %v232_v44, 2  ;;  %v587_v25 = vld [vmem:[%s1140_s2 + $0xb0] sm:$0xff] }
  0x28   :  { %v244_v6 = vadd.f32 %v243_v45, %v206_v29  ;;  %v268_v7 = vmul.f32 %v569_v51, %v735_v0  ;;  %v279_v9 = vadd.f32 %v572_v52, %v898_v56  ;;  %v146_v10 = vrot.slane %v925_v49, 1  ;;  %v577_v56 = vld [vmem:[%s1141_s3 + $0x98] sm:$0xff] }
  0x29   :  { %v211_v11 = vrot.slane %v210_v50, 1  ;;  %v269_v12 = vmul.f32 %v570_v58, %v735_v0  ;;  %v280_v14 = vadd.f32 %v573_v59, %v904_v2  ;;  %v963_v16 = vadd.f32 %v134_v55, %v133_v38  ;;  %v593_v38 = vld [vmem:[%s1141_s3 + $0xa8] sm:$0xff]  ;;  %v595_v52 = vld [vmem:[%s1141_s3 + $0xb8] sm:$0xff]  ;;  %v596_v58 = vld [vmem:[%s1141_s3 + $0xc0] sm:$0xff] }
  0x2a   :  { %v961_v15 = vpop.eup %643  ;;  %v239_v17 = vrot.slane %v238_v57, 2  ;;  %v270_v18 = vmul.f32 %v571_v1, %v735_v0  ;;  %v281_v19 = vadd.f32 %v574_v4, %v907_v3  ;;  %v217_v21 = vrot.slane %v216_v61, 1  ;;  %v588_v3 = vld [vmem:[%s1140_s2 + $0xb8] sm:$0xff] }
  0x2b   :  { %v222_v22 = vadd.f32 %v221_v62, %v220_v42  ;;  %v228_v2 = vadd.f32 %v227_v63, %v226_v43  ;;  %v282_v24 = vadd.f32 %v575_v8, %v267_v46  ;;  %v234_v26 = vadd.f32 %v233_v5, %v232_v44  ;;  %v591_v42 = vld [vmem:[%s1140_s2 + $0xd0] sm:$0xff]  ;;  %v597_v63 = vld [vmem:[%s1141_s3 + $0xc8] sm:$0xff] }
  0x2c   :  { %v245_v27 = vrot.slane %v244_v6, 2  ;;  %v283_v28 = vadd.f32 %v576_v13, %v268_v7  ;;  %647 = vtanh.f32 %v279_v9  ;;  %v212_v29 = vadd.f32 %v211_v11, %v210_v50  ;;  %v594_v44 = vld [vmem:[%s1141_s3 + $0xb0] sm:$0xff]  ;;  %v592_v50 = vld [vmem:[%s1140_s2 + $0xd8] sm:$0xff] }
  0x2d   :  { %v284_v30 = vadd.f32 %v577_v56, %v269_v12  ;;  %649 = vtanh.f32 %v280_v14  ;;  %v365_v32 = vmul.f32 %v586_v20, %v735_v0  ;;  %v986_v33 = vpop.eup %645  ;;  %v240_v34 = vadd.f32 %v239_v17, %v238_v57  ;;  %v598_v7 = vld [vmem:[%s1141_s3 + $0xd0] sm:$0xff]  ;;  %v580_v17 = vld [vmem:[%s1142_s4 + $0x78] sm:$0xff] }
  0x2e   :  { %v285_v35 = vadd.f32 %v578_v23, %v270_v18  ;;  %651 = vtanh.f32 %v281_v19  ;;  %v366_v37 = vmul.f32 %v587_v25, %v735_v0  ;;  %v223_v39 = vrot.slane %v222_v22, 1  ;;  %v579_v13 = vld [vmem:[%s1142_s4 + $0x70] sm:$0xff]  ;;  %v581_v19 = vld [vmem:[%s1142_s4 + $0x80] sm:$0xff] }
  0x2f   :  { %v229_v41 = vrot.slane %v228_v2, 1  ;;  %653 = vtanh.f32 %v282_v24  ;;  %v367_v43 = vmul.f32 %v588_v3, %v735_v0  ;;  %v218_v45 = vadd.f32 %v217_v21, %v216_v61  ;;  %v584_v3 = vld [vmem:[%s1142_s4 + $0x98] sm:$0xff] }
  0x30   :  { %v246_v46 = vadd.f32 %v245_v27, %v244_v6  ;;  %655 = vtanh.f32 %v283_v28  ;;  %v368_v51 = vmul.f32 %v589_v31, %v735_v0  ;;  %v235_v55 = vrot.slane %v234_v26, 1 }
  0x31   :  { %657 = vtanh.f32 %v284_v30  ;;  %v369_v57 = vmul.f32 %v590_v36, %v735_v0  ;;  %v380_v59 = vadd.f32 %v593_v38, %v365_v32  ;;  %v241_v61 = vrot.slane %v240_v34, 1  ;;  %v585_v32 = vld [vmem:[%s1142_s4 + $0xa0] sm:$0xff] }
  0x32   :  { %659 = vtanh.f32 %v285_v35  ;;  %v370_v62 = vmul.f32 %v591_v42, %v735_v0  ;;  %v381_v1 = vadd.f32 %v594_v44, %v366_v37  ;;  %v141_v4 = vadd.f32 %v140_v60, %v918_v40  ;;  %v599_v40 = vld [vmem:[%s1141_s3 + $0xd8] sm:$0xff] }
  0x33   :  { %v224_v5 = vadd.f32 %v223_v39, %v222_v22  ;;  %v371_v6 = vmul.f32 %v592_v50, %v735_v0  ;;  %v382_v8 = vadd.f32 %v595_v52, %v367_v43  ;;  %v147_v9 = vadd.f32 %v146_v10, %v925_v49  ;;  %v582_v22 = vld [vmem:[%s1142_s4 + $0x88] sm:$0xff]  ;;  %v1069_v39 = vld [vmem:[%s1138_s0 + $0x40] sm:$0x7f] }
  0x34   :  { %v230_v11 = vadd.f32 %v229_v41, %v228_v2  ;;  %v247_v12 = vrot.slane %v246_v46, 1  ;;  %v383_v60 = vadd.f32 %v596_v58, %v368_v51  ;;  %v236_v14 = vadd.f32 %v235_v55, %v234_v26  ;;  %v583_v26 = vld [vmem:[%s1142_s4 + $0x90] sm:$0xff] }
  0x35   :  { %v1032_v0 = vadd.f32 %v212_v29, %v921_v47  ;;  %v384_v49 = vadd.f32 %v597_v63, %v369_v57  ;;  %661 = vtanh.f32 %v380_v59  ;;  %v242_v18 = vadd.f32 %v241_v61, %v240_v34 }
  0x36   :  { %v648_v10 = vpop.eup %647  ;;  %v1038_v56 = vadd.f32 %v218_v45, %v923_v48  ;;  %v385_v20 = vadd.f32 %v598_v7, %v370_v62  ;;  %663 = vtanh.f32 %v381_v1  ;;  %v1044_v47 = vadd.f32 %v224_v5, %v933_v53  ;;  %v600_v5 = vld [vmem:[%s1142_s4 + $0xa8] sm:$0xff] }
  0x37   :  { %v650_v21 = vpop.eup %649  ;;  %v301_v2 = vmul.f32 %v648_v10, %v579_v13  ;;  %v386_v23 = vadd.f32 %v599_v40, %v371_v6  ;;  %665 = vtanh.f32 %v382_v8  ;;  %v248_v48 = vadd.f32 %v247_v12, %v246_v46 }
  0x38   :  { %v652_v24 = vpop.eup %651  ;;  %v1050_v25 = vadd.f32 %v230_v11, %v935_v54  ;;  %v302_v27 = vmul.f32 %v650_v21, %v580_v17  ;;  %667 = vtanh.f32 %v383_v60  ;;  %v1056_v28 = vadd.f32 %v236_v14, %v963_v16  ;;  %v601_v17 = vld [vmem:[%s1142_s4 + $0xb0] sm:$0xff] }
  0x39   :  { %v654_v53 = vpop.eup %653  ;;  %v303_v29 = vmul.f32 %v652_v24, %v581_v19  ;;  %v308_v30 = vrot.slane %v301_v2, 4  ;;  %669 = vtanh.f32 %v384_v49  ;;  %v1061_v54 = vadd.f32 %v242_v18, %v141_v4 }
  0x3a   :  { %v656_v31 = vpop.eup %655  ;;  %v304_v34 = vmul.f32 %v654_v53, %v582_v22  ;;  %v314_v35 = vrot.slane %v302_v27, 4  ;;  %671 = vtanh.f32 %v385_v20  ;;  %v1071_v42 = vadd.f32 %v248_v48, %v147_v9  ;;  %v602_v20 = vld [vmem:[%s1142_s4 + $0xb8] sm:$0xff] }
  0x3b   :  { %v658_v36 = vpop.eup %657  ;;  %v305_v16 = vmul.f32 %v656_v31, %v583_v26  ;;  %v309_v37 = vadd.f32 %v308_v30, %v301_v2  ;;  %v320_v38 = vrot.slane %v303_v29, 4  ;;  %673 = vtanh.f32 %v386_v23  ;;  %v603_v26 = vld [vmem:[%s1142_s4 + $0xc0] sm:$0xff]  ;;  %v605_v31 = vld [vmem:[%s1142_s4 + $0xd0] sm:$0xff] }
  0x3c   :  { %v660_v41 = vpop.eup %659  ;;  %v306_v43 = vmul.f32 %v658_v36, %v584_v3  ;;  %v315_v44 = vadd.f32 %v314_v35, %v302_v27  ;;  %v326_v45 = vrot.slane %v304_v34, 4  ;;  %v461_v59 = vrot.slane %v1069_v39, 1  ;;  %v604_v27 = vld [vmem:[%s1142_s4 + $0xc8] sm:$0xff] }
  0x3d   :  { %v307_v46 = vmul.f32 %v660_v41, %v585_v32  ;;  %v310_v50 = vrot.slane %v309_v37, 2  ;;  %v321_v51 = vadd.f32 %v320_v38, %v303_v29  ;;  %v332_v52 = vrot.slane %v305_v16, 4 }
  0x3e   :  { %v316_v55 = vrot.slane %v315_v44, 2  ;;  %v327_v57 = vadd.f32 %v326_v45, %v304_v34  ;;  %v338_v58 = vrot.slane %v306_v43, 4  ;;  %v462_v11 = vrot.slane %v1069_v39, 2 }
  0x3f   :  { %v662_v61 = vpop.eup %661  ;;  %v311_v62 = vadd.f32 %v310_v50, %v309_v37  ;;  %v322_v63 = vrot.slane %v321_v51, 2  ;;  %v333_v1 = vadd.f32 %v332_v52, %v305_v16  ;;  %v344_v4 = vrot.slane %v307_v46, 4  ;;  %v606_v37 = vld [vmem:[%s1142_s4 + $0xd8] sm:$0xff] }
  0x40   :  { %v664_v6 = vpop.eup %663  ;;  %v317_v7 = vadd.f32 %v316_v55, %v315_v44  ;;  %v328_v8 = vrot.slane %v327_v57, 2  ;;  %v339_v9 = vadd.f32 %v338_v58, %v306_v43  ;;  %v402_v21 = vmul.f32 %v662_v61, %v600_v5 }
  0x41   :  { %v666_v12 = vpop.eup %665  ;;  %v312_v13 = vrot.slane %v311_v62, 1  ;;  %v323_v40 = vadd.f32 %v322_v63, %v321_v51  ;;  %v334_v60 = vrot.slane %v333_v1, 2  ;;  %v345_v14 = vadd.f32 %v344_v4, %v307_v46 }
  0x42   :  { %v668_v49 = vpop.eup %667  ;;  %v318_v10 = vrot.slane %v317_v7, 1  ;;  %v329_v18 = vadd.f32 %v328_v8, %v327_v57  ;;  %v340_v19 = vrot.slane %v339_v9, 2  ;;  %v403_v32 = vmul.f32 %v664_v6, %v601_v17 }
  0x43   :  { %v670_v22 = vpop.eup %669  ;;  %v313_v2 = vadd.f32 %v312_v13, %v311_v62  ;;  %v324_v23 = vrot.slane %v323_v40, 1  ;;  %v335_v24 = vadd.f32 %v334_v60, %v333_v1  ;;  %v346_v48 = vrot.slane %v345_v14, 2 }
  0x44   :  { %v672_v53 = vpop.eup %671  ;;  %v319_v3 = vadd.f32 %v318_v10, %v317_v7  ;;  %v330_v29 = vrot.slane %v329_v18, 1  ;;  %v341_v30 = vadd.f32 %v340_v19, %v339_v9  ;;  %v404_v38 = vmul.f32 %v666_v12, %v602_v20 }
  0x45   :  { %v674_v34 = vpop.eup %673  ;;  %v325_v35 = vadd.f32 %v324_v23, %v323_v40  ;;  %v336_v36 = vrot.slane %v335_v24, 1  ;;  %v347_v16 = vadd.f32 %v346_v48, %v345_v14  ;;  %v405_v43 = vmul.f32 %v668_v49, %v603_v26 }
  0x46   :  { %v342_v41 = vrot.slane %v341_v30, 1  ;;  %v406_v44 = vmul.f32 %v670_v22, %v604_v27  ;;  %v463_v45 = vrot.slane %v1069_v39, 3  ;;  %v331_v46 = vadd.f32 %v330_v29, %v329_v18 }
  0x47   :  { %v350_v50 = vadd.f32 %v313_v2, %v1032_v0  ;;  %v407_v51 = vmul.f32 %v672_v53, %v605_v31  ;;  %v464_v52 = vrot.slane %v1069_v39, 4  ;;  %v337_v55 = vadd.f32 %v336_v36, %v335_v24 }
  0x48   :  { %v351_v57 = vadd.f32 %v319_v3, %v1038_v56  ;;  %v408_v58 = vmul.f32 %v674_v34, %v606_v37  ;;  %v409_v61 = vrot.slane %v402_v21, 4  ;;  %v348_v62 = vrot.slane %v347_v16, 1 }
  0x49   :  { %v352_v63 = vadd.f32 %v325_v35, %v1044_v47  ;;  %v415_v1 = vrot.slane %v403_v32, 4  ;;  %v421_v4 = vrot.slane %v404_v38, 4  ;;  %v343_v5 = vadd.f32 %v342_v41, %v341_v30 }
  0x4a   :  { %v410_v6 = vadd.f32 %v409_v61, %v402_v21  ;;  %v427_v7 = vrot.slane %v405_v43, 4  ;;  %v433_v8 = vrot.slane %v406_v44, 4  ;;  %v353_v9 = vadd.f32 %v331_v46, %v1050_v25 }
  0x4b   :  { %v416_v0 = vadd.f32 %v415_v1, %v403_v32  ;;  %v422_v12 = vadd.f32 %v421_v4, %v404_v38  ;;  %v439_v13 = vrot.slane %v407_v51, 4  ;;  %v445_v56 = vrot.slane %v408_v58, 4 }
  0x4c   :  { %v411_v40 = vrot.slane %v410_v6, 2  ;;  %v428_v60 = vadd.f32 %v427_v7, %v405_v43  ;;  %v434_v14 = vadd.f32 %v433_v8, %v406_v44  ;;  %v349_v17 = vadd.f32 %v348_v62, %v347_v16 }
  0x4d   :  { %v417_v49 = vrot.slane %v416_v0, 2  ;;  %v423_v10 = vrot.slane %v422_v12, 2  ;;  %v440_v18 = vadd.f32 %v439_v13, %v407_v51  ;;  %v446_v22 = vadd.f32 %v445_v56, %v408_v58 }
  0x4e   :  { %v412_v47 = vadd.f32 %v411_v40, %v410_v6  ;;  %v429_v19 = vrot.slane %v428_v60, 2  ;;  %v435_v20 = vrot.slane %v434_v14, 2  ;;  %v354_v21 = vadd.f32 %v337_v55, %v1056_v28 }
  0x4f   :  { %v418_v2 = vadd.f32 %v417_v49, %v416_v0  ;;  %v424_v23 = vadd.f32 %v423_v10, %v422_v12  ;;  %v441_v25 = vrot.slane %v440_v18, 2  ;;  %v447_v27 = vrot.slane %v446_v22, 2 }
  0x50   :  { %v413_v24 = vrot.slane %v412_v47, 1  ;;  %v430_v48 = vadd.f32 %v429_v19, %v428_v60  ;;  %v436_v26 = vadd.f32 %v435_v20, %v434_v14  ;;  %v355_v53 = vadd.f32 %v343_v5, %v1061_v54  ;;  %v542_v54 = vld [vmem:[%s1138_s0 + $0x20] sm:$0x7f] }
  0x51   :  { %v419_v3 = vrot.slane %v418_v2, 1  ;;  %v425_v29 = vrot.slane %v424_v23, 1  ;;  %v442_v30 = vadd.f32 %v441_v25, %v440_v18  ;;  %v448_v35 = vadd.f32 %v447_v27, %v446_v22 }
  0x52   :  { %v414_v31 = vadd.f32 %v413_v24, %v412_v47  ;;  %v431_v32 = vrot.slane %v430_v48, 1  ;;  %v437_v34 = vrot.slane %v436_v26, 1  ;;  %v356_v28 = vadd.f32 %v349_v17, %v1071_v42  ;;  %v543_v42 = vld [vmem:[%s1138_s0 + $0x28] sm:$0x7f]  ;;  %s699_s0 = smov [#allocation2]  }
  0x53   :  { %v420_v36 = vadd.f32 %v419_v3, %v418_v2  ;;  %v426_v16 = vadd.f32 %v425_v29, %v424_v23  ;;  %v443_v37 = vrot.slane %v442_v30, 1  ;;  %v449_v43 = vrot.slane %v448_v35, 1  ;;  %s526_s20 = sshll.u32 %s699_s0, 4  ;;  %s527_s20 = int_to_ptr.vmem [resolvable:$true] %s526_s20 }
  0x54   :  { %v432_v38 = vadd.f32 %v431_v32, %v430_v48  ;;  %v438_v41 = vadd.f32 %v437_v34, %v436_v26  ;;  %v451_v44 = vadd.f32 %v414_v31, %v350_v50  ;;  %v465_v58 = vrot.slane %v1069_v39, 5  ;;  %s675_s3 = scalar_lea.vmem %s527_s20, 256  ;;  %p680_p1 = scmp.lt.s32.totalorder %s527_s20, %s527_s20 }
  0x55   :  { %v444_v46 = vadd.f32 %v443_v37, %v442_v30  ;;  %v452_v51 = vadd.f32 %v420_v36, %v351_v57  ;;  %v453_v55 = vadd.f32 %v426_v16, %v352_v63  ;;  %v450_v61 = vadd.f32 %v449_v43, %v448_v35  ;;  %p676_p0 = scmp.ne.s32.totalorder %s527_s20, %s675_s3  ;;  %p681_p2 = scmp.lt.s32.totalorder %s675_s3, %s675_s3 }
  0x56   :  { %v454_v62 = vadd.f32 %v432_v38, %v353_v9  ;;  %v455_v1 = vadd.f32 %v438_v41, %v354_v21  ;;  %v466_v4 = vrot.slane %v1069_v39, 6  ;;  %v474_v50 = vadd.f32 %v1069_v39, %v451_v44 }
  0x57   :  { %v456_v5 = vadd.f32 %v444_v46, %v355_v53  ;;  %v475_v6 = vadd.f32 %v461_v59, %v452_v51  ;;  %v476_v57 = vadd.f32 %v462_v11, %v453_v55  ;;  %v52_v63 = vmul.f32 %v961_v15, %v542_v54  ;;  %p682_p3 = por %p681_p2, %p680_p1 }
  0x58   :  { %v457_v7 = vadd.f32 %v450_v61, %v356_v28  ;;  %v477_v8 = vadd.f32 %v463_v45, %v454_v62  ;;  %v478_v9 = vadd.f32 %v464_v52, %v455_v1  ;;  %v55_v0 = vmul.f32 %v986_v33, %v543_v42 }
  0x59   :  { %v479_v12 = vadd.f32 %v465_v58, %v456_v5  ;;  %v488_v13 = vrot.slane %v475_v6, 7  ;;  %v491_v40 = vrot.slane %v476_v57, 6  ;;  %p683_p4 = pnand %p682_p3, %p676_p0 }
  0x5a   :  { %v480_v60 = vadd.f32 %v466_v4, %v457_v7  ;;  %v494_v14 = vrot.slane %v477_v8, 5  ;;  %v497_v59 = vrot.slane %v478_v9, 4  ;;  %v56_v17 = vadd.f32 %v55_v0, %v52_v63 }
  0x5b   :  { %v490_v11 = vsel %vm489_vm0, %v488_v13, %v474_v50  ;;  %v500_v15 = vrot.slane %v479_v12, 3 }
  0x5c   :  { %v493_v56 = vsel %vm492_vm1, %v491_v40, %v490_v11  ;;  %v503_v45 = vrot.slane %v480_v60, 2 }
  0x5d   :  { %v496_v39 = vsel %vm495_vm2, %v494_v14, %v493_v56 }
  0x5e   :  { %v499_v52 = vsel %vm498_vm3, %v497_v59, %v496_v39 }
  0x5f   :  { %v502_v33 = vsel %vm501_vm4, %v500_v15, %v499_v52 }
  0x60   :  { %v505_v49 = vsel %vm504_vm5, %v503_v45, %v502_v33 }
  0x61   :  { %v507_v10 = vmul.f32 %v505_v49, %v56_v17 }
  0x63   :  { %v509_v18 = vrot.slane %v507_v10, 6  ;;  %v511_v47 = vrot.slane %v507_v10, 5 }
  0x65   :  { %v514_v19 = vsel %vm513_vm6, %v507_v10, %v509_v18  ;;  %520 = vst [vmem:[#allocation2 + $0x8] sm:$0x1] %v509_v18 }
  0x66   :  { %v516_v20 = vsel %vm515_vm7, %v514_v19, %v511_v47 }
  0x67   :  { %v518_v22 = vsel %vm517_vm8, %v516_v20, %v509_v18 }
  0x68   :  { %519 = vst [vmem:[#allocation2] sm:$0xff] %v518_v22 }
  0x69   :  { %686 = shalt.err (!%p683_p4)
}
  0x6a   :  { %s687_s23 = scalar_lea.hbm %s1143_s5, 256 }
  0x6b   :  { %p688_p5 = scmp.ne.s32.totalorder %s1143_s5, %s687_s23  ;;  %p691_p6 = scmp.lt.u32.totalorder %s687_s23, %s1143_s5 }
  0x6d   :  { %p693_p7 = pnand %p691_p6, %p688_p5 }
  0x6f   :  { %696 = shalt.err (!%p693_p7)
}
  0x70   :  { %s700_s1 = smov 128   ;;  %s701_s28 = smov 8  }
  0x71   :  { %532 = dma.vmem_to_hbm [thread:$0]  %s527_s20, 256, %s1143_s5, [#allocation3], %s700_s1, %s700_s1, %s701_s28  }
  0x72   :  { %697 = dma.done.wait [#allocation3], 256  }
  0x73   :  { %698 = vsyncadd [#allocation3], 4294967040 }
  0x74   :  { %536 = vsyncpa [#allocation3], 1 }

</bundles_post_ra>
